<compile_context>
chip_gen: v7x
topology: tpu7x:2x2x1
jax: 0.10.0
libtpu: 0.0.40
codegen_flags: <defaults>
</compile_context>

<pallas_src>
from functools import partial

import jax
import jax.numpy as jnp
from jax.experimental import pallas as pl
from jax.experimental.pallas import tpu as pltpu

HIDDEN = 20          # 20 * infl_ratio (infl_ratio = 1)
BN_EPS = 1e-4
KPAD = 128           # padded hidden / contraction width (full lane width)


def _sign_pm1(x):
    # BNN binarization: >= 0 -> +1, < 0 -> -1 (exactly representable in bf16).
    return jnp.where(x >= 0, 1.0, -1.0)


def bnn_1blk_20_kernel(x_ref, slab_ref, o_ref):
    f_in = x_ref.shape[1]
    n_rows = slab_ref.shape[0]
    o = o_ref.shape[1]
    r1 = f_in              # w5t rows start  (w1t occupies rows [0, f_in))
    r2 = f_in + KPAD       # param rows start (gamma, beta)

    # ---- fc1: BinaryLinear (weights pre-binarized, pre-transposed, bf16) ----
    x = x_ref[...].astype(jnp.bfloat16)                        # (B, F_in)
    w1t = slab_ref[0:f_in, :]                                  # (F_in, 128) bf16
    h = jnp.dot(x, w1t, preferred_element_type=jnp.float32)    # (B, 128) f32
    # lanes >= HIDDEN of w1t are zero -> h[:, HIDDEN:] == 0 exactly.

    # ---- bn1: training-mode batch stats, folded into one scale/shift --------
    pp = slab_ref[r2:n_rows, :].astype(jnp.float32)            # (16, 128)
    gamma = pp[0:1, :]                                         # 0 beyond lane H-1
    beta = pp[1:2, :]                                          # 1 at lane H (bias ch)

    mean = jnp.mean(h, axis=0, keepdims=True)                  # (1, 128)
    msq = jnp.mean(h * h, axis=0, keepdims=True)
    var = jnp.maximum(msq - mean * mean, 0.0)                  # biased variance
    scale = gamma * jax.lax.rsqrt(var + BN_EPS)
    shift = beta - mean * scale
    hn = h * scale + shift

    # ---- htanh1: BinaryStraightThrough forward = sign ------------------------
    a = _sign_pm1(hn).astype(jnp.bfloat16)                     # (B, 128)
    # a[:, HIDDEN] == +1 (bias channel), a[:, HIDDEN+1:] == +1 but hits zero
    # rows of w5t, so they contribute nothing.

    # ---- fc5: BinaryLinear with b5 folded in as row HIDDEN of w5t -----------
    w5t = slab_ref[r1:r2, 0:o]                                 # (128, O) bf16
    z = jnp.dot(a, w5t, preferred_element_type=jnp.float32)    # (B, O) f32

    # ---- logsoftmax over features (dim=1) ------------------------------------
    m = jnp.max(z, axis=1, keepdims=True)
    shifted = z - m
    lse = jnp.log(jnp.sum(jnp.exp(shifted), axis=1, keepdims=True))
    o_ref[...] = (shifted - lse).astype(o_ref.dtype)


def prepare_params(w1, b1, gamma, beta, w5, b5):
    """One-time parameter transforms (off the kernel's critical path):
    binarize + transpose weights, fold b5 into a bias channel, drop b1
    (it cancels exactly under training-mode BatchNorm), and pack everything
    into a single lane-padded bf16 slab."""
    del b1  # cancels in the BN mean subtraction; no effect on the output
    h, f_in = w1.shape
    o = w5.shape[0]
    assert h < KPAD, "need a spare lane for the folded-bias channel"

    r1 = f_in
    r2 = f_in + KPAD
    n_rows = ((r2 + 2 + 15) // 16) * 16     # bf16 sublane tile = 16 rows

    slab = jnp.zeros((n_rows, KPAD), jnp.float32)
    w1t_b = _sign_pm1(w1).T                                   # (F_in, H)
    w5t_b = _sign_pm1(w5).T                                   # (H, O)
    slab = slab.at[0:f_in, :h].set(w1t_b)                     # col H stays 0
    slab = slab.at[r1:r1 + h, :o].set(w5t_b)
    slab = slab.at[r1 + h, :o].set(b5.reshape(-1))            # folded b5 row
    slab = slab.at[r2, :h].set(gamma.reshape(-1))             # gamma[H:] = 0
    slab = slab.at[r2 + 1, :h].set(beta.reshape(-1))
    slab = slab.at[r2 + 1, h].set(1.0)                        # beta[H] = 1 -> a=+1
    return slab.astype(jnp.bfloat16)


@partial(jax.jit, static_argnames=("out_features",))
def bnn_1blk_20_forward(x, packed_slab, *, out_features):
    b = x.shape[0]
    vmem = pl.BlockSpec(memory_space=pltpu.MemorySpace.VMEM)
    # Everything is tiny: gridless single invocation, both operands whole-array
    # resident in VMEM (no grid machinery, no index maps, 2 input DMAs total).
    return pl.pallas_call(
        bnn_1blk_20_kernel,
        out_shape=jax.ShapeDtypeStruct((b, out_features), jnp.float32),
        in_specs=[vmem, vmem],
        out_specs=vmem,
        compiler_params=pltpu.CompilerParams(
            vmem_limit_bytes=16 * 1024 * 1024),
    )(x, packed_slab)


if __name__ == "__main__":
    key = jax.random.PRNGKey(0)
    kx, k1, k2, k3, k4, k5, k6 = jax.random.split(key, 7)

    batch = 8
    in_features = 32
    out_features = 10

    x = jax.random.normal(kx, (batch, in_features), jnp.float32)
    w1 = jax.random.normal(k1, (HIDDEN, in_features), jnp.float32) * 0.5
    b1 = jax.random.normal(k2, (1, HIDDEN), jnp.float32) * 0.1
    gamma = 1.0 + 0.1 * jax.random.normal(k3, (1, HIDDEN), jnp.float32)
    beta = 0.1 * jax.random.normal(k4, (1, HIDDEN), jnp.float32)
    w5 = jax.random.normal(k5, (out_features, HIDDEN), jnp.float32) * 0.5
    b5 = jax.random.normal(k6, (1, out_features), jnp.float32) * 0.1

    slab = prepare_params(w1, b1, gamma, beta, w5, b5)
    out = bnn_1blk_20_forward(x, slab, out_features=out_features)
    out = jax.block_until_ready(out)

    # Pure-JAX reference with identical numerics (same folded bf16 params,
    # same padded-width math, f32 accumulation).
    r1, r2 = in_features, in_features + KPAD
    xb = x.astype(jnp.bfloat16)
    w1t_p = slab[0:in_features, :]
    w5t_p = slab[r1:r2, :out_features]
    g_p = slab[r2, :].astype(jnp.float32)[None, :]
    bt_p = slab[r2 + 1, :].astype(jnp.float32)[None, :]

    h_ref = jnp.dot(xb, w1t_p, preferred_element_type=jnp.float32)
    mu = jnp.mean(h_ref, axis=0, keepdims=True)
    var = jnp.maximum(jnp.mean(h_ref * h_ref, axis=0, keepdims=True) - mu * mu, 0.0)
    sc = g_p * jax.lax.rsqrt(var + BN_EPS)
    sh = bt_p - mu * sc
    a_ref = jnp.where(h_ref * sc + sh >= 0, 1.0, -1.0).astype(jnp.bfloat16)
    z_ref = jnp.dot(a_ref, w5t_p, preferred_element_type=jnp.float32)
    ref = jax.nn.log_softmax(z_ref, axis=1)

    assert jnp.allclose(out, ref, atol=1e-4, rtol=1e-4), "mismatch vs reference"
    print("KERNEL_OK")
</pallas_src>

<mosaic_0001>
module attributes {stable_mosaic.version = 11 : i64} {
  func.func @bnn_1blk_20_kernel(%arg0: memref<8x32xf32, #tpu.memory_space<vmem>>, %arg1: memref<176x128xbf16, #tpu.memory_space<vmem>>, %arg2: memref<8x10xf32, #tpu.memory_space<vmem>>) attributes {dimension_semantics = [], scalar_prefetch = 0 : i64, scratch_operands = 0 : i64, tpu.core_type = #tpu.core_type<tc>} {
    %c0 = arith.constant 0 : index
    %c0_0 = arith.constant 0 : index
    %0 = vector.load %arg0[%c0, %c0_0] : memref<8x32xf32, #tpu.memory_space<vmem>>, vector<8x32xf32>
    %1 = arith.truncf %0 : vector<8x32xf32> to vector<8x32xbf16>
    %c0_1 = arith.constant 0 : index
    %c0_2 = arith.constant 0 : index
    %2 = vector.load %arg1[%c0_1, %c0_2] : memref<176x128xbf16, #tpu.memory_space<vmem>>, vector<32x128xbf16>
    %cst = arith.constant dense<0.000000e+00> : vector<8x128xf32>
    %3 = tpu.matmul %1, %2, %cst {dimension_numbers = #tpu.dot_dimension_numbers<[1], [0], [0], [1], [0, 0, 1, 1], [], []>} : vector<8x32xbf16>, vector<32x128xbf16>, vector<8x128xf32> -> vector<8x128xf32>
    %c160 = arith.constant 160 : index
    %c0_3 = arith.constant 0 : index
    %4 = vector.load %arg1[%c160, %c0_3] : memref<176x128xbf16, #tpu.memory_space<vmem>>, vector<16x128xbf16>
    %5 = arith.extf %4 : vector<16x128xbf16> to vector<16x128xf32>
    %6 = vector.extract_strided_slice %5 {offsets = [0, 0], sizes = [1, 128], strides = [1, 1]} : vector<16x128xf32> to vector<1x128xf32>
    %7 = vector.extract_strided_slice %5 {offsets = [1, 0], sizes = [1, 128], strides = [1, 1]} : vector<16x128xf32> to vector<1x128xf32>
    %cst_4 = arith.constant dense<0.000000e+00> : vector<128xf32>
    %8 = vector.multi_reduction <add>, %3, %cst_4 [0] : vector<8x128xf32> to vector<128xf32>
    %9 = vector.shape_cast %8 : vector<128xf32> to vector<1x128xf32>
    %cst_5 = arith.constant 8.000000e+00 : f32
    %10 = vector.broadcast %cst_5 : f32 to vector<1x128xf32>
    %11 = arith.divf %9, %10 : vector<1x128xf32>
    %12 = arith.mulf %3, %3 : vector<8x128xf32>
    %cst_6 = arith.constant dense<0.000000e+00> : vector<128xf32>
    %13 = vector.multi_reduction <add>, %12, %cst_6 [0] : vector<8x128xf32> to vector<128xf32>
    %14 = vector.shape_cast %13 : vector<128xf32> to vector<1x128xf32>
    %cst_7 = arith.constant 8.000000e+00 : f32
    %15 = vector.broadcast %cst_7 : f32 to vector<1x128xf32>
    %16 = arith.divf %14, %15 : vector<1x128xf32>
    %17 = arith.mulf %11, %11 : vector<1x128xf32>
    %18 = arith.subf %16, %17 : vector<1x128xf32>
    %cst_8 = arith.constant 0.000000e+00 : f32
    %19 = vector.broadcast %cst_8 : f32 to vector<1x128xf32>
    %20 = arith.maximumf %18, %19 : vector<1x128xf32>
    %cst_9 = arith.constant 9.99999974E-5 : f32
    %21 = vector.broadcast %cst_9 : f32 to vector<1x128xf32>
    %22 = arith.addf %20, %21 : vector<1x128xf32>
    %23 = math.rsqrt %22 : vector<1x128xf32>
    %24 = arith.mulf %6, %23 : vector<1x128xf32>
    %25 = arith.mulf %11, %24 : vector<1x128xf32>
    %26 = arith.subf %7, %25 : vector<1x128xf32>
    %27 = vector.broadcast %24 : vector<1x128xf32> to vector<8x128xf32>
    %28 = arith.mulf %3, %27 : vector<8x128xf32>
    %29 = vector.broadcast %26 : vector<1x128xf32> to vector<8x128xf32>
    %30 = arith.addf %28, %29 : vector<8x128xf32>
    %cst_10 = arith.constant 0.000000e+00 : f32
    %31 = vector.broadcast %cst_10 : f32 to vector<8x128xf32>
    %32 = arith.cmpf oge, %30, %31 : vector<8x128xf32>
    %cst_11 = arith.constant 1.000000e+00 : f32
    %cst_12 = arith.constant -1.000000e+00 : f32
    %33 = vector.broadcast %cst_11 : f32 to vector<8x128xf32>
    %34 = vector.broadcast %cst_12 : f32 to vector<8x128xf32>
    %35 = arith.select %32, %33, %34 : vector<8x128xi1>, vector<8x128xf32>
    %36 = arith.truncf %35 : vector<8x128xf32> to vector<8x128xbf16>
    %c32 = arith.constant 32 : index
    %c0_13 = arith.constant 0 : index
    %37 = vector.load %arg1[%c32, %c0_13] : memref<176x128xbf16, #tpu.memory_space<vmem>>, vector<128x10xbf16>
    %cst_14 = arith.constant dense<0.000000e+00> : vector<8x10xf32>
    %38 = tpu.matmul %36, %37, %cst_14 {dimension_numbers = #tpu.dot_dimension_numbers<[1], [0], [0], [1], [0, 0, 1, 1], [], []>} : vector<8x128xbf16>, vector<128x10xbf16>, vector<8x10xf32> -> vector<8x10xf32>
    %cst_15 = arith.constant dense<0xFF800000> : vector<8xf32>
    %39 = vector.multi_reduction <maximumf>, %38, %cst_15 [1] : vector<8x10xf32> to vector<8xf32>
    %40 = vector.shape_cast %39 : vector<8xf32> to vector<8x1xf32>
    %41 = vector.broadcast %40 : vector<8x1xf32> to vector<8x10xf32>
    %42 = arith.subf %38, %41 : vector<8x10xf32>
    %43 = math.exp %42 : vector<8x10xf32>
    %cst_16 = arith.constant dense<0.000000e+00> : vector<8xf32>
    %44 = vector.multi_reduction <add>, %43, %cst_16 [1] : vector<8x10xf32> to vector<8xf32>
    %45 = vector.shape_cast %44 : vector<8xf32> to vector<8x1xf32>
    %46 = math.log %45 : vector<8x1xf32>
    %47 = vector.broadcast %46 : vector<8x1xf32> to vector<8x10xf32>
    %48 = arith.subf %42, %47 : vector<8x10xf32>
    %c0_17 = arith.constant 0 : index
    %c0_18 = arith.constant 0 : index
    %49 = vector.load %arg2[%c0_17, %c0_18] : memref<8x10xf32, #tpu.memory_space<vmem>>, vector<8x10xf32>
    tpu.vector_store %arg2[%c0_17, %c0_18], %48 {strides = array<i32>} : memref<8x10xf32, #tpu.memory_space<vmem>>, vector<8x10xf32>,
    return
  }
}

</mosaic_0001>

<bundles_post_ra>
// kernel: bnn_1blk_20_forward.1
= control target key start
LH: loop header
LB: loop body
LE: loop exit
PB: predicated region body
PF: predicated region fallthrough
CT: control target
= control target key end

     0   :  { %7 = vsyncpa [#allocation3], 0  ;;  %s493_s0 = inlined_call_operand.hbm [shape: f32[8,32], index: 0, kind: input, shape index: {}]   ;;  %s494_s1 = inlined_call_operand.hbm [shape: bf16[176,128], index: 1, kind: input, shape index: {}]   ;;  %s495_s2 = inlined_call_operand.hbm [shape: f32[8,10], index: 2, kind: output, shape index: {}]  }
   0x1   :  { %8 = vsyncpa [#allocation6], 0 }
   0x2   :  { %9 = vsyncpa [#allocation4], 0  ;;  %s424_s9 = smov [#allocation2]   ;;  %s425_s11 = smov [#allocation5]  }
   0x3   :  { %s16_s10 = sshll.u32 %s424_s9, 4  ;;  %s25_s12 = sshll.u32 %s425_s11, 4  ;;  %s17_s10 = int_to_ptr.vmem [resolvable:$true] %s16_s10  ;;  %s447_s12 = int_to_ptr.vmem [resolvable:$true] %s25_s12 }
   0x4   :  { %s352_s15 = scalar_lea.hbm %s493_s0, 128 }
   0x5   :  { %p353_p0 = scmp.ne.s32.totalorder %s493_s0, %s352_s15  ;;  %p356_p1 = scmp.lt.u32.totalorder %s352_s15, %s493_s0 }
   0x7   :  { %p358_p2 = pnand %p356_p1, %p353_p0 }
   0x9   :  { %361 = shalt.err (!%p358_p2)
}
   0xa   :  { %s362_s20 = scalar_lea.vmem %s17_s10, 128  ;;  %p367_p4 = scmp.lt.s32.totalorder %s17_s10, %s17_s10 }
   0xb   :  { %p363_p3 = scmp.ne.s32.totalorder %s17_s10, %s362_s20  ;;  %p368_p5 = scmp.lt.s32.totalorder %s362_s20, %s362_s20 }
   0xd   :  { %p369_p6 = por %p368_p5, %p367_p4 }
   0xf   :  { %p370_p7 = pnand %p369_p6, %p363_p3 }
  0x11   :  { %373 = shalt.err (!%p370_p7)
}
  0x12   :  { %19 = dma.hbm_to_vmem [thread:$0]  %s493_s0, 128, %s17_s10, [#allocation3]  }
  0x13   :  { %s374_s25 = scalar_lea.hbm %s494_s1, 1408 }
  0x14   :  { %p375_p8 = scmp.ne.s32.totalorder %s494_s1, %s374_s25  ;;  %p378_p9 = scmp.lt.u32.totalorder %s374_s25, %s494_s1 }
  0x16   :  { %p380_p10 = pnand %p378_p9, %p375_p8 }
  0x18   :  { %383 = shalt.err (!%p380_p10)
}
  0x19   :  { %s384_s30 = scalar_lea.vmem %s447_s12, 1408  ;;  %p389_p12 = scmp.lt.s32.totalorder %s447_s12, %s447_s12 }
  0x1a   :  { %p385_p11 = scmp.ne.s32.totalorder %s447_s12, %s384_s30  ;;  %p390_p13 = scmp.lt.s32.totalorder %s384_s30, %s384_s30 }
  0x1c   :  { %p391_p0 = por %p390_p13, %p389_p12 }
  0x1e   :  { %p392_p1 = pnand %p391_p0, %p385_p11 }
  0x20   :  { %395 = shalt.err (!%p392_p1)
}
  0x21   :  { %s426_s0 = smov 64   ;;  %s427_s3 = smov 4  }
  0x22   :  { %31 = dma.hbm_to_vmem [thread:$0]  %s494_s1, 1408, %s447_s12, [#allocation6], %s426_s0, %s426_s0, %s427_s3  }
  0x23   :  { %418 = dma.done.wait [#allocation3], 128  }
  0x24   :  { %419 = vsyncadd [#allocation3], 4294967168 }
  0x25   :  { %420 = dma.done.wait [#allocation6], 1408  }
  0x26   :  { %421 = vsyncadd [#allocation6], 4294965888  ;;  %v428_v0 = vmov 0.0   ;;  %vm429_vm0 = vmmov 0   ;;  %v336_v1 = vld [vmem:[#allocation5] sm:$0xff]   ;;  %v337_v2 = vld [vmem:[#allocation5 + $0x8] sm:$0xff]   ;;  %v130_v36 = vlaneseq }
  0x27   :  { %300 = vmatprep.subr.bf16.mxu0 %v428_v0  ;;  %304 = vmatprep.mubr.msk.bf16.mxu0 %vm429_vm0, %v428_v0  ;;  %v39_v3 = vld [vmem:[#allocation2] sm:$0xff]  ;;  %vm57_vm1 = vcmask 261120   ;;  %v338_v5 = vld [vmem:[#allocation5 + $0x10] sm:$0xff]   ;;  %v340_v7 = vld [vmem:[#allocation5 + $0x20] sm:$0xff]   ;;  %v430_v51 = vmov -1.0   ;;  %vm247_vm3 = vcmask 80896  }
  0x28   :  { %308 = vmatprep.subr.bf16.mxu1 %v428_v0  ;;  %324 = vmatprep.mubr.msk.bf16.mxu1 %vm429_vm0, %v428_v0  ;;  %v40_v4 = vpack.c.bf16 %v39_v3, %v39_v3  ;;  %v339_v6 = vld [vmem:[#allocation5 + $0x18] sm:$0xff]   ;;  %v341_v8 = vld [vmem:[#allocation5 + $0x28] sm:$0xff]   ;;  %v342_v9 = vld [vmem:[#allocation5 + $0x30] sm:$0xff]   ;;  %v131_v39 = vshrl.u32 %v130_v36, 7  ;;  %s431_s1 = smov [#allocation7]  }
  0x29   :  { %301 = vmatpush3.bf16.msra.mxu0 %v336_v1  ;;  %309 = vmatpush3.bf16.msra.mxu1 %v338_v5  ;;  %v343_v10 = vld [vmem:[#allocation5 + $0x38] sm:$0xff]   ;;  %v344_v11 = vld [vmem:[#allocation5 + $0x40] sm:$0xff]   ;;  %v345_v12 = vld [vmem:[#allocation5 + $0x48] sm:$0xff]   ;;  %s267_s6 = sshll.u32 %s431_s1, 4  ;;  %s268_s6 = int_to_ptr.vmem [resolvable:$true] %s267_s6 }
  0x2a   :  { %302 = vmatprep.subr.bf16.mxu0 %v428_v0  ;;  %310 = vmatprep.subr.bf16.mxu1 %v428_v0  ;;  %v101_v37 = vld [vmem:[#allocation5 + $0x50] sm:$0xf]  ;;  %v132_v42 = vsub.s32 0, %v131_v39  ;;  %v137_v46 = vsub.s32 1, %v131_v39  ;;  %s396_s7 = scalar_lea.vmem %s268_s6, 128  ;;  %p401_p3 = scmp.lt.s32.totalorder %s268_s6, %s268_s6 }
  0x2b   :  { %v102_v38 = vunpack.c.l.bf16 %v101_v37  ;;  %p397_p2 = scmp.ne.s32.totalorder %s268_s6, %s396_s7  ;;  %p402_p4 = scmp.lt.s32.totalorder %s396_s7, %s396_s7 }
  0x2d   :  { %303 = vmatpush3.bf16.msra.mxu0 %v337_v2  ;;  %311 = vmatpush3.bf16.msra.mxu1 %v339_v6  ;;  %p403_p5 = por %p402_p4, %p401_p3 }
  0x2e   :  { %312 = vmatprep.subr.bf16.mxu1 %v428_v0 }
  0x2f   :  { %p404_p6 = pnand %p403_p5, %p397_p2 }
  0x30   :  { %305 = vmatmul.mubr.msk.bf16.vlgmr.msra.gmra.mrb[0].mxu0 %vm57_vm1, %v40_v4 }
  0x31   :  { %313 = vmatpush3.bf16.msra.mxu1 %v340_v7 }
  0x32   :  { %314 = vmatprep.subr.bf16.mxu1 %v428_v0 }
  0x35   :  { %315 = vmatpush3.bf16.msra.mxu1 %v341_v8 }
  0x36   :  { %316 = vmatprep.subr.bf16.mxu1 %v428_v0 }
  0x39   :  { %317 = vmatpush3.bf16.msra.mxu1 %v342_v9 }
  0x3a   :  { %318 = vmatprep.subr.bf16.mxu1 %v428_v0 }
  0x3d   :  { %319 = vmatpush3.bf16.msra.mxu1 %v343_v10 }
  0x3e   :  { %320 = vmatprep.subr.bf16.mxu1 %v428_v0 }
  0x41   :  { %321 = vmatpush3.bf16.msra.mxu1 %v344_v11 }
  0x42   :  { %322 = vmatprep.subr.bf16.mxu1 %v428_v0 }
  0x45   :  { %323 = vmatpush3.bf16.msra.mxu1 %v345_v12 }
 0x103   :  { %v95_v13 = vpop.f32.mrb[0].mxu0 }
 0x104   :  { %v103_v14 = vrot.slane %v95_v13, 4  ;;  %v111_v15 = vmul.f32 %v95_v13, %v95_v13  ;;  %v306_v16 = vpop.f32.mrb[1].mxu0 }
 0x105   :  { %v98_v17 = vpop.f32.mrb[2].mxu0 }
 0x106   :  { %v104_v18 = vadd.f32 %v103_v14, %v95_v13  ;;  %v112_v19 = vrot.slane %v111_v15, 4  ;;  %v307_v20 = vpop.f32.mrb[3].mxu0 }
 0x108   :  { %v105_v21 = vrot.slane %v104_v18, 2  ;;  %v113_v22 = vadd.f32 %v112_v19, %v111_v15 }
 0x10a   :  { %v106_v23 = vadd.f32 %v105_v21, %v104_v18  ;;  %v114_v24 = vrot.slane %v113_v22, 2 }
 0x10c   :  { %v107_v25 = vrot.slane %v106_v23, 1  ;;  %v115_v26 = vadd.f32 %v114_v24, %v113_v22 }
 0x10e   :  { %v108_v27 = vadd.f32 %v107_v25, %v106_v23  ;;  %v116_v28 = vrot.slane %v115_v26, 1 }
 0x110   :  { %v110_v29 = vmul.f32 0.125, %v108_v27  ;;  %v117_v30 = vadd.f32 %v116_v28, %v115_v26 }
 0x112   :  { %v118_v31 = vmul.f32 0.125, %v117_v30  ;;  %v119_v32 = vmul.f32 %v110_v29, %v110_v29 }
 0x114   :  { %v120_v33 = vsub.f32 %v118_v31, %v119_v32 }
 0x116   :  { %v121_v34 = vmax.f32 %v120_v33, 0.0 }
 0x118   :  { %v122_v35 = vadd.f32 0.0001, %v121_v34 }
 0x11a   :  { %346 = vrsqrt.f32 %v122_v35 }
 0x124   :  { %v347_v40 = vpop.eup %346 }
 0x125   :  { %v124_v41 = vmul.f32 %v347_v40, %v102_v38 }
 0x127   :  { %v125_v43 = vmul.f32 %v124_v41, %v110_v29  ;;  %v133_v44 = vrot.slane %v124_v41, %v132_v42 }
 0x129   :  { %v127_v45 = vrot.slane %v125_v43, 7  ;;  %v134_v48 = vmul.f32 %v133_v44, %v95_v13 }
 0x12b   :  { %v129_v47 = vsub.f32 %v102_v38, %v127_v45 }
 0x12d   :  { %v138_v49 = vrot.slane %v129_v47, %v137_v46 }
 0x12f   :  { %v139_v50 = vadd.f32 %v138_v49, %v134_v48 }
 0x131   :  { %vm140_vm2 = vcmp.ge.f32.partialorder %v139_v50, 0.0 }
 0x132   :  { %v141_v52 = vsel %vm140_vm2, 1.0, %v430_v51 }
 0x133   :  { %v142_v53 = vpack.c.bf16 %v141_v52, %v141_v52 }
 0x135   :  { %325 = vmatmul.mubr.bf16.vlgmr.msra.gmra.mrb[0].mxu1 %v142_v53 }
 0x208   :  { %v241_v54 = vpop.f32.mrb[0].mxu1 }
 0x209   :  { %v326_v55 = vpop.f32.mrb[1].mxu1  ;;  %v248_v56 = vsel %vm247_vm3, %v241_v54, -inf }
 0x20a   :  { %249 = vmax.xlane.f32.xlu0 %v248_v56  ;;  %v244_v57 = vpop.f32.mrb[2].mxu1 }
 0x20b   :  { %v327_v58 = vpop.f32.mrb[3].mxu1 }
 0x297   :  { %v250_v59 = vpop.xlane.xlu0 %249 }
 0x298   :  { %v251_v60 = vsub.f32 %v241_v54, %v250_v59 }
 0x29a   :  { %v252_v61 = vmul.f32 1.442695, %v251_v60 }
 0x29c   :  { %348 = vpow2.f32 %v252_v61 }
 0x2a6   :  { %v349_v62 = vpop.eup %348 }
 0x2a7   :  { %v254_v63 = vsel %vm247_vm3, %v349_v62, 0.0 }
 0x2a8   :  { %255 = vadd.xlane.f32.xlu0 %v254_v63 }
 0x335   :  { %v256_v0 = vpop.xlane.xlu0 %255 }
 0x336   :  { %350 = vlog2.f32 %v256_v0 }
 0x340   :  { %v351_v1 = vpop.eup %350 }
 0x341   :  { %v258_v2 = vmul.f32 0.6931472, %v351_v1 }
 0x343   :  { %v259_v3 = vsub.f32 %v251_v60, %v258_v2 }
 0x345   :  { %260 = vst.msk [vmem:[#allocation7] sm:$0xff] %vm247_vm3, %v259_v3 }
 0x346   :  { %407 = shalt.err (!%p404_p6)
}
 0x347   :  { %s408_s10 = scalar_lea.hbm %s495_s2, 128 }
 0x348   :  { %p409_p7 = scmp.ne.s32.totalorder %s495_s2, %s408_s10  ;;  %p412_p8 = scmp.lt.u32.totalorder %s408_s10, %s495_s2 }
 0x34a   :  { %p414_p9 = pnand %p412_p8, %p409_p7 }
 0x34c   :  { %417 = shalt.err (!%p414_p9)
}
 0x34d   :  { %270 = dma.vmem_to_hbm [thread:$0]  %s268_s6, 128, %s495_s2, [#allocation4]  }
 0x34e   :  { %422 = dma.done.wait [#allocation4], 128  }
 0x34f   :  { %423 = vsyncadd [#allocation4], 4294967168 }
 0x350   :  { %274 = vsyncpa [#allocation3], 1 }
 0x351   :  { %275 = vsyncpa [#allocation6], 1 }
 0x352   :  { %276 = vsyncpa [#allocation4], 1 }

</bundles_post_ra>
